<compile_context>
chip_gen: v7x
topology: tpu7x:2x2x1
jax: 0.10.0
libtpu: 0.0.40
codegen_flags: <defaults>
</compile_context>

<pallas_src>
import jax
import jax.numpy as jnp
from jax.experimental import pallas as pl
from jax.experimental.pallas import tpu as pltpu


# (in_features, out_features) per Linear layer, encoder then decoder.
_LAYER_DIMS = ((2, 4), (4, 2), (2, 1), (1, 2), (2, 4), (4, 2))
# Sigmoid applied after this layer?
_LAYER_SIGMOID = (True, True, False, True, True, True)

_LANES = 128


def _param_offsets():
    offs = []
    off = 0
    for (fin, fout) in _LAYER_DIMS:
        offs.append(off)
        off += fin * fout + fout          # row-major weight block then bias block
    return tuple(offs), off


_PARAM_OFFSETS, _NUM_PARAMS = _param_offsets()


def _cdiv(a, b):
    return -(-a // b)


def _round_up(a, m):
    return _cdiv(a, m) * m


def _autoencoder_kernel(params_ref, x_ref, enc_ref, dec_ref):
    """Fused encoder+decoder for one (features, rows, 128) batch tile.

    params_ref : SMEM f32[_NUM_PARAMS]        packed weights+biases (scalar reads)
    x_ref      : VMEM f32[2, rows, 128]       input; each x_ref[f] is a dense slab
    enc_ref    : VMEM f32[1, rows, 128]
    dec_ref    : VMEM f32[2, rows, 128]
    """
    # Read every parameter exactly once per grid step (one sld + splat each).
    pv = [params_ref[i] for i in range(_NUM_PARAMS)]

    def sigmoid(z):
        # sigmoid(x) = 0.5 * tanh(0.5 * x) + 0.5 : one EUP op + two VPU ops.
        return 0.5 * jnp.tanh(0.5 * z) + 0.5

    def linear(rows, layer):
        fin, fout = _LAYER_DIMS[layer]
        off = _PARAM_OFFSETS[layer]
        outs = []
        for f in range(fout):
            # out[f] = b[f] + sum_k w[f, k] * h[k]   (pure VPU scalar-broadcast MACs)
            acc = rows[0] * pv[off + f * fin]
            for k in range(1, fin):
                acc = acc + rows[k] * pv[off + f * fin + k]
            acc = acc + pv[off + fin * fout + f]
            if _LAYER_SIGMOID[layer]:
                acc = sigmoid(acc)
            outs.append(acc)
        return outs

    # Dense (rows, 128) per-feature slabs; all math in float32.
    h = [x_ref[0].astype(jnp.float32), x_ref[1].astype(jnp.float32)]

    # Encoder.
    h = linear(h, 0)
    h = linear(h, 1)
    enc = linear(h, 2)          # no activation on the last encoder layer
    # Decoder.
    d = linear(enc, 3)
    d = linear(d, 4)
    d = linear(d, 5)

    enc_ref[0] = enc[0].astype(enc_ref.dtype)
    dec_ref[0] = d[0].astype(dec_ref.dtype)
    dec_ref[1] = d[1].astype(dec_ref.dtype)


def pack_params(params):
    """Flatten PyTorch-style [(w(out,in), b(out,)), ...] into one f32 vector."""
    flat = []
    for (w, b), (fin, fout) in zip(params, _LAYER_DIMS):
        w = jnp.asarray(w, jnp.float32)
        b = jnp.asarray(b, jnp.float32)
        assert w.shape == (fout, fin) and b.shape == (fout,)
        flat.append(w.reshape(-1))      # row-major (out, in)
        flat.append(b.reshape(-1))
    packed = jnp.concatenate(flat)
    assert packed.shape == (_NUM_PARAMS,)
    return packed


def _choose_tiling(n_blk, tile_rows):
    """Pick (sublane-rows per tile, number of tiles) over n_blk 128-sample blocks."""
    tile_rows = max(8, (int(tile_rows) // 8) * 8)
    if n_blk < 16:
        # Tiny batch: single tile; block's second-to-last dim == full array dim,
        # which satisfies the (8, 128) rule without extra padding.
        return n_blk, 1
    # Otherwise use tiles of at most tile_rows rows, and at least 2 tiles so the
    # "parallel" grid axis can feed both TensorCores on v7x.
    num_tiles = max(2, _cdiv(n_blk, tile_rows))
    rows = _round_up(_cdiv(n_blk, num_tiles), 8)
    return rows, _cdiv(n_blk, rows)


def autoencoder_forward(x, params, *, tile_rows=512):
    """Fused AutoEncoder forward. x: (N, 2). Returns (encoded (N,1), decoded (N,2))."""
    x = jnp.asarray(x, jnp.float32)
    N, F = x.shape
    assert F == 2, "AutoEncoder expects 2 input features"

    packed = pack_params(params)

    n_blk = _cdiv(N, _LANES)
    rows, num_tiles = _choose_tiling(n_blk, tile_rows)
    n_blk_pad = rows * num_tiles            # grid divides exactly: no partial tiles
    n_pad = n_blk_pad * _LANES

    # Feature-major, lane-dense 3D layout: (features, blocks-of-128, 128).
    # (transpose + pad + reshape fuses into one XLA copy; keep the surrounding
    #  model feature-major to eliminate even this pass.)
    xt = x.T                                # (2, N)
    if n_pad != N:
        xt = jnp.pad(xt, ((0, 0), (0, n_pad - N)))
    xt = xt.reshape(2, n_blk_pad, _LANES)

    enc_t, dec_t = pl.pallas_call(
        _autoencoder_kernel,
        out_shape=(
            jax.ShapeDtypeStruct((1, n_blk_pad, _LANES), jnp.float32),
            jax.ShapeDtypeStruct((2, n_blk_pad, _LANES), jnp.float32),
        ),
        grid_spec=pltpu.PrefetchScalarGridSpec(
            num_scalar_prefetch=0,
            grid=(num_tiles,),
            in_specs=[
                # All 51 parameters as scalars in SMEM (single untiled residency).
                pl.BlockSpec(memory_space=pltpu.MemorySpace.SMEM),
                # Input batch tile: dense (rows, 128) slab per feature.
                pl.BlockSpec((2, rows, _LANES), lambda i: (0, i, 0)),
            ],
            out_specs=[
                pl.BlockSpec((1, rows, _LANES), lambda i: (0, i, 0)),   # encoded
                pl.BlockSpec((2, rows, _LANES), lambda i: (0, i, 0)),   # decoded
            ],
        ),
        compiler_params=pltpu.CompilerParams(
            dimension_semantics=("parallel",),   # batch tiles across v7x's 2 TCs
        ),
    )(packed, xt)

    encoded = enc_t.reshape(1, n_pad)[:, :N].T          # (N, 1)
    decoded = dec_t.reshape(2, n_pad)[:, :N].T          # (N, 2)
    return encoded, decoded


def init_params(key):
    """Deterministic PyTorch-Linear-shaped parameters: weight (out, in), bias (out,)."""
    params = []
    for (fin, fout) in _LAYER_DIMS:
        key, kw, kb = jax.random.split(key, 3)
        bound = 1.0 / (fin ** 0.5)              # mimic torch.nn.Linear init range
        w = jax.random.uniform(kw, (fout, fin), jnp.float32, -bound, bound)
        b = jax.random.uniform(kb, (fout,), jnp.float32, -bound, bound)
        params.append((w, b))
    return params


def reference_forward(x, params):
    """Plain-JAX reference replicating the PyTorch forward."""
    def lin(h, w, b):
        return h @ w.T + b

    (w1, b1), (w2, b2), (w3, b3), (w4, b4), (w5, b5), (w6, b6) = params
    h = jax.nn.sigmoid(lin(x, w1, b1))
    h = jax.nn.sigmoid(lin(h, w2, b2))
    enc = lin(h, w3, b3)
    d = jax.nn.sigmoid(lin(enc, w4, b4))
    d = jax.nn.sigmoid(lin(d, w5, b5))
    d = jax.nn.sigmoid(lin(d, w6, b6))
    return enc, d


if __name__ == "__main__":
    key = jax.random.PRNGKey(0)
    k_params, k_x1, k_x2, k_x3 = jax.random.split(key, 4)

    params = init_params(k_params)

    # 1) Tiny batch (single 1-row tile, exercises the padding + slicing path).
    x = jax.random.normal(k_x1, (8, 2), jnp.float32)
    enc, dec = autoencoder_forward(x, params)
    enc, dec = jax.block_until_ready((enc, dec))
    enc_ref, dec_ref = reference_forward(x, params)
    assert enc.shape == (8, 1) and dec.shape == (8, 2)
    assert jnp.allclose(enc, enc_ref, atol=1e-5, rtol=1e-4)
    assert jnp.allclose(dec, dec_ref, atol=1e-5, rtol=1e-4)

    # 2) Ragged batch, still a single small tile.
    x2 = jax.random.normal(k_x2, (200, 2), jnp.float32)
    enc2, dec2 = autoencoder_forward(x2, params)
    enc2, dec2 = jax.block_until_ready((enc2, dec2))
    enc2_ref, dec2_ref = reference_forward(x2, params)
    assert enc2.shape == (200, 1) and dec2.shape == (200, 2)
    assert jnp.allclose(enc2, enc2_ref, atol=1e-5, rtol=1e-4)
    assert jnp.allclose(dec2, dec2_ref, atol=1e-5, rtol=1e-4)

    # 3) Ragged batch forced onto a multi-step grid (exercises grid > 1 tiling).
    x3 = jax.random.normal(k_x3, (2065, 2), jnp.float32)
    enc3, dec3 = autoencoder_forward(x3, params, tile_rows=8)
    enc3, dec3 = jax.block_until_ready((enc3, dec3))
    enc3_ref, dec3_ref = reference_forward(x3, params)
    assert enc3.shape == (2065, 1) and dec3.shape == (2065, 2)
    assert jnp.allclose(enc3, enc3_ref, atol=1e-5, rtol=1e-4)
    assert jnp.allclose(dec3, dec3_ref, atol=1e-5, rtol=1e-4)

    print("KERNEL_OK")
</pallas_src>

<mosaic_0001>
module attributes {stable_mosaic.version = 11 : i64} {
  func.func @_autoencoder_kernel(%arg0: i32, %arg1: memref<51xf32, #tpu.memory_space<smem>>, %arg2: memref<2x1x128xf32, #tpu.memory_space<vmem>>, %arg3: memref<1x1x128xf32, #tpu.memory_space<vmem>>, %arg4: memref<2x1x128xf32, #tpu.memory_space<vmem>>) attributes {dimension_semantics = [#tpu.dimension_semantics<parallel>], iteration_bounds = array<i64: 1>, scalar_prefetch = 0 : i64, scratch_operands = 0 : i64, tpu.core_type = #tpu.core_type<tc>, window_params = [{transform_indices = @transform_0, window_bounds = array<i64: 51>}, {transform_indices = @transform_1, window_bounds = array<i64: 2, 1, 128>}, {transform_indices = @transform_2, window_bounds = array<i64: 1, 1, 128>}, {transform_indices = @transform_3, window_bounds = array<i64: 2, 1, 128>}]} {
    %c0 = arith.constant 0 : index
    %0 = memref.load %arg1[%c0] : memref<51xf32, #tpu.memory_space<smem>>
    %c1 = arith.constant 1 : index
    %1 = memref.load %arg1[%c1] : memref<51xf32, #tpu.memory_space<smem>>
    %c2 = arith.constant 2 : index
    %2 = memref.load %arg1[%c2] : memref<51xf32, #tpu.memory_space<smem>>
    %c3 = arith.constant 3 : index
    %3 = memref.load %arg1[%c3] : memref<51xf32, #tpu.memory_space<smem>>
    %c4 = arith.constant 4 : index
    %4 = memref.load %arg1[%c4] : memref<51xf32, #tpu.memory_space<smem>>
    %c5 = arith.constant 5 : index
    %5 = memref.load %arg1[%c5] : memref<51xf32, #tpu.memory_space<smem>>
    %c6 = arith.constant 6 : index
    %6 = memref.load %arg1[%c6] : memref<51xf32, #tpu.memory_space<smem>>
    %c7 = arith.constant 7 : index
    %7 = memref.load %arg1[%c7] : memref<51xf32, #tpu.memory_space<smem>>
    %c8 = arith.constant 8 : index
    %8 = memref.load %arg1[%c8] : memref<51xf32, #tpu.memory_space<smem>>
    %c9 = arith.constant 9 : index
    %9 = memref.load %arg1[%c9] : memref<51xf32, #tpu.memory_space<smem>>
    %c10 = arith.constant 10 : index
    %10 = memref.load %arg1[%c10] : memref<51xf32, #tpu.memory_space<smem>>
    %c11 = arith.constant 11 : index
    %11 = memref.load %arg1[%c11] : memref<51xf32, #tpu.memory_space<smem>>
    %c12 = arith.constant 12 : index
    %12 = memref.load %arg1[%c12] : memref<51xf32, #tpu.memory_space<smem>>
    %c13 = arith.constant 13 : index
    %13 = memref.load %arg1[%c13] : memref<51xf32, #tpu.memory_space<smem>>
    %c14 = arith.constant 14 : index
    %14 = memref.load %arg1[%c14] : memref<51xf32, #tpu.memory_space<smem>>
    %c15 = arith.constant 15 : index
    %15 = memref.load %arg1[%c15] : memref<51xf32, #tpu.memory_space<smem>>
    %c16 = arith.constant 16 : index
    %16 = memref.load %arg1[%c16] : memref<51xf32, #tpu.memory_space<smem>>
    %c17 = arith.constant 17 : index
    %17 = memref.load %arg1[%c17] : memref<51xf32, #tpu.memory_space<smem>>
    %c18 = arith.constant 18 : index
    %18 = memref.load %arg1[%c18] : memref<51xf32, #tpu.memory_space<smem>>
    %c19 = arith.constant 19 : index
    %19 = memref.load %arg1[%c19] : memref<51xf32, #tpu.memory_space<smem>>
    %c20 = arith.constant 20 : index
    %20 = memref.load %arg1[%c20] : memref<51xf32, #tpu.memory_space<smem>>
    %c21 = arith.constant 21 : index
    %21 = memref.load %arg1[%c21] : memref<51xf32, #tpu.memory_space<smem>>
    %c22 = arith.constant 22 : index
    %22 = memref.load %arg1[%c22] : memref<51xf32, #tpu.memory_space<smem>>
    %c23 = arith.constant 23 : index
    %23 = memref.load %arg1[%c23] : memref<51xf32, #tpu.memory_space<smem>>
    %c24 = arith.constant 24 : index
    %24 = memref.load %arg1[%c24] : memref<51xf32, #tpu.memory_space<smem>>
    %c25 = arith.constant 25 : index
    %25 = memref.load %arg1[%c25] : memref<51xf32, #tpu.memory_space<smem>>
    %c26 = arith.constant 26 : index
    %26 = memref.load %arg1[%c26] : memref<51xf32, #tpu.memory_space<smem>>
    %c27 = arith.constant 27 : index
    %27 = memref.load %arg1[%c27] : memref<51xf32, #tpu.memory_space<smem>>
    %c28 = arith.constant 28 : index
    %28 = memref.load %arg1[%c28] : memref<51xf32, #tpu.memory_space<smem>>
    %c29 = arith.constant 29 : index
    %29 = memref.load %arg1[%c29] : memref<51xf32, #tpu.memory_space<smem>>
    %c30 = arith.constant 30 : index
    %30 = memref.load %arg1[%c30] : memref<51xf32, #tpu.memory_space<smem>>
    %c31 = arith.constant 31 : index
    %31 = memref.load %arg1[%c31] : memref<51xf32, #tpu.memory_space<smem>>
    %c32 = arith.constant 32 : index
    %32 = memref.load %arg1[%c32] : memref<51xf32, #tpu.memory_space<smem>>
    %c33 = arith.constant 33 : index
    %33 = memref.load %arg1[%c33] : memref<51xf32, #tpu.memory_space<smem>>
    %c34 = arith.constant 34 : index
    %34 = memref.load %arg1[%c34] : memref<51xf32, #tpu.memory_space<smem>>
    %c35 = arith.constant 35 : index
    %35 = memref.load %arg1[%c35] : memref<51xf32, #tpu.memory_space<smem>>
    %c36 = arith.constant 36 : index
    %36 = memref.load %arg1[%c36] : memref<51xf32, #tpu.memory_space<smem>>
    %c37 = arith.constant 37 : index
    %37 = memref.load %arg1[%c37] : memref<51xf32, #tpu.memory_space<smem>>
    %c38 = arith.constant 38 : index
    %38 = memref.load %arg1[%c38] : memref<51xf32, #tpu.memory_space<smem>>
    %c39 = arith.constant 39 : index
    %39 = memref.load %arg1[%c39] : memref<51xf32, #tpu.memory_space<smem>>
    %c40 = arith.constant 40 : index
    %40 = memref.load %arg1[%c40] : memref<51xf32, #tpu.memory_space<smem>>
    %c41 = arith.constant 41 : index
    %41 = memref.load %arg1[%c41] : memref<51xf32, #tpu.memory_space<smem>>
    %c42 = arith.constant 42 : index
    %42 = memref.load %arg1[%c42] : memref<51xf32, #tpu.memory_space<smem>>
    %c43 = arith.constant 43 : index
    %43 = memref.load %arg1[%c43] : memref<51xf32, #tpu.memory_space<smem>>
    %c44 = arith.constant 44 : index
    %44 = memref.load %arg1[%c44] : memref<51xf32, #tpu.memory_space<smem>>
    %c45 = arith.constant 45 : index
    %45 = memref.load %arg1[%c45] : memref<51xf32, #tpu.memory_space<smem>>
    %c46 = arith.constant 46 : index
    %46 = memref.load %arg1[%c46] : memref<51xf32, #tpu.memory_space<smem>>
    %c47 = arith.constant 47 : index
    %47 = memref.load %arg1[%c47] : memref<51xf32, #tpu.memory_space<smem>>
    %c48 = arith.constant 48 : index
    %48 = memref.load %arg1[%c48] : memref<51xf32, #tpu.memory_space<smem>>
    %c49 = arith.constant 49 : index
    %49 = memref.load %arg1[%c49] : memref<51xf32, #tpu.memory_space<smem>>
    %c50 = arith.constant 50 : index
    %50 = memref.load %arg1[%c50] : memref<51xf32, #tpu.memory_space<smem>>
    %c0_0 = arith.constant 0 : index
    %c0_1 = arith.constant 0 : index
    %c0_2 = arith.constant 0 : index
    %51 = vector.load %arg2[%c0_0, %c0_1, %c0_2] : memref<2x1x128xf32, #tpu.memory_space<vmem>>, vector<1x1x128xf32>
    %52 = vector.shape_cast %51 : vector<1x1x128xf32> to vector<1x128xf32>
    %c1_3 = arith.constant 1 : index
    %c0_4 = arith.constant 0 : index
    %c0_5 = arith.constant 0 : index
    %53 = vector.load %arg2[%c1_3, %c0_4, %c0_5] : memref<2x1x128xf32, #tpu.memory_space<vmem>>, vector<1x1x128xf32>
    %54 = vector.shape_cast %53 : vector<1x1x128xf32> to vector<1x128xf32>
    %55 = vector.broadcast %0 : f32 to vector<1x128xf32>
    %56 = arith.mulf %52, %55 : vector<1x128xf32>
    %57 = vector.broadcast %1 : f32 to vector<1x128xf32>
    %58 = arith.mulf %54, %57 : vector<1x128xf32>
    %59 = arith.addf %56, %58 : vector<1x128xf32>
    %60 = vector.broadcast %8 : f32 to vector<1x128xf32>
    %61 = arith.addf %59, %60 : vector<1x128xf32>
    %cst = arith.constant 5.000000e-01 : f32
    %62 = vector.broadcast %cst : f32 to vector<1x128xf32>
    %63 = arith.mulf %62, %61 : vector<1x128xf32>
    %64 = math.tanh %63 : vector<1x128xf32>
    %cst_6 = arith.constant 5.000000e-01 : f32
    %65 = vector.broadcast %cst_6 : f32 to vector<1x128xf32>
    %66 = arith.mulf %65, %64 : vector<1x128xf32>
    %cst_7 = arith.constant 5.000000e-01 : f32
    %67 = vector.broadcast %cst_7 : f32 to vector<1x128xf32>
    %68 = arith.addf %66, %67 : vector<1x128xf32>
    %69 = vector.broadcast %2 : f32 to vector<1x128xf32>
    %70 = arith.mulf %52, %69 : vector<1x128xf32>
    %71 = vector.broadcast %3 : f32 to vector<1x128xf32>
    %72 = arith.mulf %54, %71 : vector<1x128xf32>
    %73 = arith.addf %70, %72 : vector<1x128xf32>
    %74 = vector.broadcast %9 : f32 to vector<1x128xf32>
    %75 = arith.addf %73, %74 : vector<1x128xf32>
    %cst_8 = arith.constant 5.000000e-01 : f32
    %76 = vector.broadcast %cst_8 : f32 to vector<1x128xf32>
    %77 = arith.mulf %76, %75 : vector<1x128xf32>
    %78 = math.tanh %77 : vector<1x128xf32>
    %cst_9 = arith.constant 5.000000e-01 : f32
    %79 = vector.broadcast %cst_9 : f32 to vector<1x128xf32>
    %80 = arith.mulf %79, %78 : vector<1x128xf32>
    %cst_10 = arith.constant 5.000000e-01 : f32
    %81 = vector.broadcast %cst_10 : f32 to vector<1x128xf32>
    %82 = arith.addf %80, %81 : vector<1x128xf32>
    %83 = vector.broadcast %4 : f32 to vector<1x128xf32>
    %84 = arith.mulf %52, %83 : vector<1x128xf32>
    %85 = vector.broadcast %5 : f32 to vector<1x128xf32>
    %86 = arith.mulf %54, %85 : vector<1x128xf32>
    %87 = arith.addf %84, %86 : vector<1x128xf32>
    %88 = vector.broadcast %10 : f32 to vector<1x128xf32>
    %89 = arith.addf %87, %88 : vector<1x128xf32>
    %cst_11 = arith.constant 5.000000e-01 : f32
    %90 = vector.broadcast %cst_11 : f32 to vector<1x128xf32>
    %91 = arith.mulf %90, %89 : vector<1x128xf32>
    %92 = math.tanh %91 : vector<1x128xf32>
    %cst_12 = arith.constant 5.000000e-01 : f32
    %93 = vector.broadcast %cst_12 : f32 to vector<1x128xf32>
    %94 = arith.mulf %93, %92 : vector<1x128xf32>
    %cst_13 = arith.constant 5.000000e-01 : f32
    %95 = vector.broadcast %cst_13 : f32 to vector<1x128xf32>
    %96 = arith.addf %94, %95 : vector<1x128xf32>
    %97 = vector.broadcast %6 : f32 to vector<1x128xf32>
    %98 = arith.mulf %52, %97 : vector<1x128xf32>
    %99 = vector.broadcast %7 : f32 to vector<1x128xf32>
    %100 = arith.mulf %54, %99 : vector<1x128xf32>
    %101 = arith.addf %98, %100 : vector<1x128xf32>
    %102 = vector.broadcast %11 : f32 to vector<1x128xf32>
    %103 = arith.addf %101, %102 : vector<1x128xf32>
    %cst_14 = arith.constant 5.000000e-01 : f32
    %104 = vector.broadcast %cst_14 : f32 to vector<1x128xf32>
    %105 = arith.mulf %104, %103 : vector<1x128xf32>
    %106 = math.tanh %105 : vector<1x128xf32>
    %cst_15 = arith.constant 5.000000e-01 : f32
    %107 = vector.broadcast %cst_15 : f32 to vector<1x128xf32>
    %108 = arith.mulf %107, %106 : vector<1x128xf32>
    %cst_16 = arith.constant 5.000000e-01 : f32
    %109 = vector.broadcast %cst_16 : f32 to vector<1x128xf32>
    %110 = arith.addf %108, %109 : vector<1x128xf32>
    %111 = vector.broadcast %12 : f32 to vector<1x128xf32>
    %112 = arith.mulf %68, %111 : vector<1x128xf32>
    %113 = vector.broadcast %13 : f32 to vector<1x128xf32>
    %114 = arith.mulf %82, %113 : vector<1x128xf32>
    %115 = arith.addf %112, %114 : vector<1x128xf32>
    %116 = vector.broadcast %14 : f32 to vector<1x128xf32>
    %117 = arith.mulf %96, %116 : vector<1x128xf32>
    %118 = arith.addf %115, %117 : vector<1x128xf32>
    %119 = vector.broadcast %15 : f32 to vector<1x128xf32>
    %120 = arith.mulf %110, %119 : vector<1x128xf32>
    %121 = arith.addf %118, %120 : vector<1x128xf32>
    %122 = vector.broadcast %20 : f32 to vector<1x128xf32>
    %123 = arith.addf %121, %122 : vector<1x128xf32>
    %cst_17 = arith.constant 5.000000e-01 : f32
    %124 = vector.broadcast %cst_17 : f32 to vector<1x128xf32>
    %125 = arith.mulf %124, %123 : vector<1x128xf32>
    %126 = math.tanh %125 : vector<1x128xf32>
    %cst_18 = arith.constant 5.000000e-01 : f32
    %127 = vector.broadcast %cst_18 : f32 to vector<1x128xf32>
    %128 = arith.mulf %127, %126 : vector<1x128xf32>
    %cst_19 = arith.constant 5.000000e-01 : f32
    %129 = vector.broadcast %cst_19 : f32 to vector<1x128xf32>
    %130 = arith.addf %128, %129 : vector<1x128xf32>
    %131 = vector.broadcast %16 : f32 to vector<1x128xf32>
    %132 = arith.mulf %68, %131 : vector<1x128xf32>
    %133 = vector.broadcast %17 : f32 to vector<1x128xf32>
    %134 = arith.mulf %82, %133 : vector<1x128xf32>
    %135 = arith.addf %132, %134 : vector<1x128xf32>
    %136 = vector.broadcast %18 : f32 to vector<1x128xf32>
    %137 = arith.mulf %96, %136 : vector<1x128xf32>
    %138 = arith.addf %135, %137 : vector<1x128xf32>
    %139 = vector.broadcast %19 : f32 to vector<1x128xf32>
    %140 = arith.mulf %110, %139 : vector<1x128xf32>
    %141 = arith.addf %138, %140 : vector<1x128xf32>
    %142 = vector.broadcast %21 : f32 to vector<1x128xf32>
    %143 = arith.addf %141, %142 : vector<1x128xf32>
    %cst_20 = arith.constant 5.000000e-01 : f32
    %144 = vector.broadcast %cst_20 : f32 to vector<1x128xf32>
    %145 = arith.mulf %144, %143 : vector<1x128xf32>
    %146 = math.tanh %145 : vector<1x128xf32>
    %cst_21 = arith.constant 5.000000e-01 : f32
    %147 = vector.broadcast %cst_21 : f32 to vector<1x128xf32>
    %148 = arith.mulf %147, %146 : vector<1x128xf32>
    %cst_22 = arith.constant 5.000000e-01 : f32
    %149 = vector.broadcast %cst_22 : f32 to vector<1x128xf32>
    %150 = arith.addf %148, %149 : vector<1x128xf32>
    %151 = vector.broadcast %22 : f32 to vector<1x128xf32>
    %152 = arith.mulf %130, %151 : vector<1x128xf32>
    %153 = vector.broadcast %23 : f32 to vector<1x128xf32>
    %154 = arith.mulf %150, %153 : vector<1x128xf32>
    %155 = arith.addf %152, %154 : vector<1x128xf32>
    %156 = vector.broadcast %24 : f32 to vector<1x128xf32>
    %157 = arith.addf %155, %156 : vector<1x128xf32>
    %158 = vector.broadcast %25 : f32 to vector<1x128xf32>
    %159 = arith.mulf %157, %158 : vector<1x128xf32>
    %160 = vector.broadcast %27 : f32 to vector<1x128xf32>
    %161 = arith.addf %159, %160 : vector<1x128xf32>
    %cst_23 = arith.constant 5.000000e-01 : f32
    %162 = vector.broadcast %cst_23 : f32 to vector<1x128xf32>
    %163 = arith.mulf %162, %161 : vector<1x128xf32>
    %164 = math.tanh %163 : vector<1x128xf32>
    %cst_24 = arith.constant 5.000000e-01 : f32
    %165 = vector.broadcast %cst_24 : f32 to vector<1x128xf32>
    %166 = arith.mulf %165, %164 : vector<1x128xf32>
    %cst_25 = arith.constant 5.000000e-01 : f32
    %167 = vector.broadcast %cst_25 : f32 to vector<1x128xf32>
    %168 = arith.addf %166, %167 : vector<1x128xf32>
    %169 = vector.broadcast %26 : f32 to vector<1x128xf32>
    %170 = arith.mulf %157, %169 : vector<1x128xf32>
    %171 = vector.broadcast %28 : f32 to vector<1x128xf32>
    %172 = arith.addf %170, %171 : vector<1x128xf32>
    %cst_26 = arith.constant 5.000000e-01 : f32
    %173 = vector.broadcast %cst_26 : f32 to vector<1x128xf32>
    %174 = arith.mulf %173, %172 : vector<1x128xf32>
    %175 = math.tanh %174 : vector<1x128xf32>
    %cst_27 = arith.constant 5.000000e-01 : f32
    %176 = vector.broadcast %cst_27 : f32 to vector<1x128xf32>
    %177 = arith.mulf %176, %175 : vector<1x128xf32>
    %cst_28 = arith.constant 5.000000e-01 : f32
    %178 = vector.broadcast %cst_28 : f32 to vector<1x128xf32>
    %179 = arith.addf %177, %178 : vector<1x128xf32>
    %180 = vector.broadcast %29 : f32 to vector<1x128xf32>
    %181 = arith.mulf %168, %180 : vector<1x128xf32>
    %182 = vector.broadcast %30 : f32 to vector<1x128xf32>
    %183 = arith.mulf %179, %182 : vector<1x128xf32>
    %184 = arith.addf %181, %183 : vector<1x128xf32>
    %185 = vector.broadcast %37 : f32 to vector<1x128xf32>
    %186 = arith.addf %184, %185 : vector<1x128xf32>
    %cst_29 = arith.constant 5.000000e-01 : f32
    %187 = vector.broadcast %cst_29 : f32 to vector<1x128xf32>
    %188 = arith.mulf %187, %186 : vector<1x128xf32>
    %189 = math.tanh %188 : vector<1x128xf32>
    %cst_30 = arith.constant 5.000000e-01 : f32
    %190 = vector.broadcast %cst_30 : f32 to vector<1x128xf32>
    %191 = arith.mulf %190, %189 : vector<1x128xf32>
    %cst_31 = arith.constant 5.000000e-01 : f32
    %192 = vector.broadcast %cst_31 : f32 to vector<1x128xf32>
    %193 = arith.addf %191, %192 : vector<1x128xf32>
    %194 = vector.broadcast %31 : f32 to vector<1x128xf32>
    %195 = arith.mulf %168, %194 : vector<1x128xf32>
    %196 = vector.broadcast %32 : f32 to vector<1x128xf32>
    %197 = arith.mulf %179, %196 : vector<1x128xf32>
    %198 = arith.addf %195, %197 : vector<1x128xf32>
    %199 = vector.broadcast %38 : f32 to vector<1x128xf32>
    %200 = arith.addf %198, %199 : vector<1x128xf32>
    %cst_32 = arith.constant 5.000000e-01 : f32
    %201 = vector.broadcast %cst_32 : f32 to vector<1x128xf32>
    %202 = arith.mulf %201, %200 : vector<1x128xf32>
    %203 = math.tanh %202 : vector<1x128xf32>
    %cst_33 = arith.constant 5.000000e-01 : f32
    %204 = vector.broadcast %cst_33 : f32 to vector<1x128xf32>
    %205 = arith.mulf %204, %203 : vector<1x128xf32>
    %cst_34 = arith.constant 5.000000e-01 : f32
    %206 = vector.broadcast %cst_34 : f32 to vector<1x128xf32>
    %207 = arith.addf %205, %206 : vector<1x128xf32>
    %208 = vector.broadcast %33 : f32 to vector<1x128xf32>
    %209 = arith.mulf %168, %208 : vector<1x128xf32>
    %210 = vector.broadcast %34 : f32 to vector<1x128xf32>
    %211 = arith.mulf %179, %210 : vector<1x128xf32>
    %212 = arith.addf %209, %211 : vector<1x128xf32>
    %213 = vector.broadcast %39 : f32 to vector<1x128xf32>
    %214 = arith.addf %212, %213 : vector<1x128xf32>
    %cst_35 = arith.constant 5.000000e-01 : f32
    %215 = vector.broadcast %cst_35 : f32 to vector<1x128xf32>
    %216 = arith.mulf %215, %214 : vector<1x128xf32>
    %217 = math.tanh %216 : vector<1x128xf32>
    %cst_36 = arith.constant 5.000000e-01 : f32
    %218 = vector.broadcast %cst_36 : f32 to vector<1x128xf32>
    %219 = arith.mulf %218, %217 : vector<1x128xf32>
    %cst_37 = arith.constant 5.000000e-01 : f32
    %220 = vector.broadcast %cst_37 : f32 to vector<1x128xf32>
    %221 = arith.addf %219, %220 : vector<1x128xf32>
    %222 = vector.broadcast %35 : f32 to vector<1x128xf32>
    %223 = arith.mulf %168, %222 : vector<1x128xf32>
    %224 = vector.broadcast %36 : f32 to vector<1x128xf32>
    %225 = arith.mulf %179, %224 : vector<1x128xf32>
    %226 = arith.addf %223, %225 : vector<1x128xf32>
    %227 = vector.broadcast %40 : f32 to vector<1x128xf32>
    %228 = arith.addf %226, %227 : vector<1x128xf32>
    %cst_38 = arith.constant 5.000000e-01 : f32
    %229 = vector.broadcast %cst_38 : f32 to vector<1x128xf32>
    %230 = arith.mulf %229, %228 : vector<1x128xf32>
    %231 = math.tanh %230 : vector<1x128xf32>
    %cst_39 = arith.constant 5.000000e-01 : f32
    %232 = vector.broadcast %cst_39 : f32 to vector<1x128xf32>
    %233 = arith.mulf %232, %231 : vector<1x128xf32>
    %cst_40 = arith.constant 5.000000e-01 : f32
    %234 = vector.broadcast %cst_40 : f32 to vector<1x128xf32>
    %235 = arith.addf %233, %234 : vector<1x128xf32>
    %236 = vector.broadcast %41 : f32 to vector<1x128xf32>
    %237 = arith.mulf %193, %236 : vector<1x128xf32>
    %238 = vector.broadcast %42 : f32 to vector<1x128xf32>
    %239 = arith.mulf %207, %238 : vector<1x128xf32>
    %240 = arith.addf %237, %239 : vector<1x128xf32>
    %241 = vector.broadcast %43 : f32 to vector<1x128xf32>
    %242 = arith.mulf %221, %241 : vector<1x128xf32>
    %243 = arith.addf %240, %242 : vector<1x128xf32>
    %244 = vector.broadcast %44 : f32 to vector<1x128xf32>
    %245 = arith.mulf %235, %244 : vector<1x128xf32>
    %246 = arith.addf %243, %245 : vector<1x128xf32>
    %247 = vector.broadcast %49 : f32 to vector<1x128xf32>
    %248 = arith.addf %246, %247 : vector<1x128xf32>
    %cst_41 = arith.constant 5.000000e-01 : f32
    %249 = vector.broadcast %cst_41 : f32 to vector<1x128xf32>
    %250 = arith.mulf %249, %248 : vector<1x128xf32>
    %251 = math.tanh %250 : vector<1x128xf32>
    %cst_42 = arith.constant 5.000000e-01 : f32
    %252 = vector.broadcast %cst_42 : f32 to vector<1x128xf32>
    %253 = arith.mulf %252, %251 : vector<1x128xf32>
    %cst_43 = arith.constant 5.000000e-01 : f32
    %254 = vector.broadcast %cst_43 : f32 to vector<1x128xf32>
    %255 = arith.addf %253, %254 : vector<1x128xf32>
    %256 = vector.broadcast %45 : f32 to vector<1x128xf32>
    %257 = arith.mulf %193, %256 : vector<1x128xf32>
    %258 = vector.broadcast %46 : f32 to vector<1x128xf32>
    %259 = arith.mulf %207, %258 : vector<1x128xf32>
    %260 = arith.addf %257, %259 : vector<1x128xf32>
    %261 = vector.broadcast %47 : f32 to vector<1x128xf32>
    %262 = arith.mulf %221, %261 : vector<1x128xf32>
    %263 = arith.addf %260, %262 : vector<1x128xf32>
    %264 = vector.broadcast %48 : f32 to vector<1x128xf32>
    %265 = arith.mulf %235, %264 : vector<1x128xf32>
    %266 = arith.addf %263, %265 : vector<1x128xf32>
    %267 = vector.broadcast %50 : f32 to vector<1x128xf32>
    %268 = arith.addf %266, %267 : vector<1x128xf32>
    %cst_44 = arith.constant 5.000000e-01 : f32
    %269 = vector.broadcast %cst_44 : f32 to vector<1x128xf32>
    %270 = arith.mulf %269, %268 : vector<1x128xf32>
    %271 = math.tanh %270 : vector<1x128xf32>
    %cst_45 = arith.constant 5.000000e-01 : f32
    %272 = vector.broadcast %cst_45 : f32 to vector<1x128xf32>
    %273 = arith.mulf %272, %271 : vector<1x128xf32>
    %cst_46 = arith.constant 5.000000e-01 : f32
    %274 = vector.broadcast %cst_46 : f32 to vector<1x128xf32>
    %275 = arith.addf %273, %274 : vector<1x128xf32>
    %c0_47 = arith.constant 0 : index
    %c0_48 = arith.constant 0 : index
    %c0_49 = arith.constant 0 : index
    %276 = vector.load %arg3[%c0_47, %c0_48, %c0_49] : memref<1x1x128xf32, #tpu.memory_space<vmem>>, vector<1x1x128xf32>
    %277 = vector.shape_cast %276 : vector<1x1x128xf32> to vector<1x128xf32>
    %278 = vector.shape_cast %157 : vector<1x128xf32> to vector<1x1x128xf32>
    tpu.vector_store %arg3[%c0_47, %c0_48, %c0_49], %278 {strides = array<i32>} : memref<1x1x128xf32, #tpu.memory_space<vmem>>, vector<1x1x128xf32>,
    %c0_50 = arith.constant 0 : index
    %c0_51 = arith.constant 0 : index
    %c0_52 = arith.constant 0 : index
    %279 = vector.load %arg4[%c0_50, %c0_51, %c0_52] : memref<2x1x128xf32, #tpu.memory_space<vmem>>, vector<1x1x128xf32>
    %280 = vector.shape_cast %279 : vector<1x1x128xf32> to vector<1x128xf32>
    %281 = vector.shape_cast %255 : vector<1x128xf32> to vector<1x1x128xf32>
    tpu.vector_store %arg4[%c0_50, %c0_51, %c0_52], %281 {strides = array<i32>} : memref<2x1x128xf32, #tpu.memory_space<vmem>>, vector<1x1x128xf32>,
    %c1_53 = arith.constant 1 : index
    %c0_54 = arith.constant 0 : index
    %c0_55 = arith.constant 0 : index
    %282 = vector.load %arg4[%c1_53, %c0_54, %c0_55] : memref<2x1x128xf32, #tpu.memory_space<vmem>>, vector<1x1x128xf32>
    %283 = vector.shape_cast %282 : vector<1x1x128xf32> to vector<1x128xf32>
    %284 = vector.shape_cast %275 : vector<1x128xf32> to vector<1x1x128xf32>
    tpu.vector_store %arg4[%c1_53, %c0_54, %c0_55], %284 {strides = array<i32>} : memref<2x1x128xf32, #tpu.memory_space<vmem>>, vector<1x1x128xf32>,
    return
  }
  func.func @transform_0(%arg0: i32) -> i32 {
    %c0_i32 = arith.constant 0 : i32
    %c0_i32_0 = arith.constant 0 : i32
    return %c0_i32 : i32
  }
  func.func @transform_1(%arg0: i32) -> (i32, i32, i32) {
    %c0_i32 = arith.constant 0 : i32
    %c0_i32_0 = arith.constant 0 : i32
    %c0_i32_1 = arith.constant 0 : i32
    return %c0_i32, %arg0, %c0_i32_0 : i32, i32, i32
  }
  func.func @transform_2(%arg0: i32) -> (i32, i32, i32) {
    %c0_i32 = arith.constant 0 : i32
    %c0_i32_0 = arith.constant 0 : i32
    %c0_i32_1 = arith.constant 0 : i32
    return %c0_i32, %arg0, %c0_i32_0 : i32, i32, i32
  }
  func.func @transform_3(%arg0: i32) -> (i32, i32, i32) {
    %c0_i32 = arith.constant 0 : i32
    %c0_i32_0 = arith.constant 0 : i32
    %c0_i32_1 = arith.constant 0 : i32
    return %c0_i32, %arg0, %c0_i32_0 : i32, i32, i32
  }
}

</mosaic_0001>

<bundles_post_ra>
// kernel: tpu_custom_call.1
= control target key start
LH: loop header
LB: loop body
LE: loop exit
PB: predicated region body
PF: predicated region fallthrough
CT: control target
= control target key end

     0   :  { %9 = vsyncpa [#allocation4], 0  ;;  %s550_s0 = inlined_call_operand.hbm [shape: f32[51], index: 0, kind: input, shape index: {}]   ;;  %s551_s1 = inlined_call_operand.vmem [shape: f32[2,1,128], index: 1, kind: input, shape index: {}]   ;;  %s552_s2 = inlined_call_operand.hbm [shape: f32[1,1,128], index: 2, kind: output, shape index: {0}]   ;;  %s553_s3 = inlined_call_operand.hbm [shape: f32[2,1,128], index: 3, kind: output, shape index: {1}]  }
   0x1   :  { %10 = vsyncpa [#allocation3], 0 }
   0x2   :  { %11 = vsyncpa [#allocation7], 0  ;;  %s378_s14 = scalar_lea.hbm %s550_s0, 16 }
   0x3   :  { %p379_p0 = scmp.ne.s32.totalorder %s550_s0, %s378_s14  ;;  %p382_p1 = scmp.lt.u32.totalorder %s378_s14, %s550_s0 }
   0x5   :  { %p384_p2 = pnand %p382_p1, %p379_p0 }
   0x7   :  { %387 = shalt.err (!%p384_p2)
}
   0x8   :  { %s438_s19 = smov [#allocation2]  }
   0x9   :  { %19 = dma.hbm_to_smem %s550_s0, 16, %s438_s19, [#allocation4]  }
   0xa   :  { %432 = dma.done.wait [#allocation4], 16  }
   0xb   :  { %433 = vsyncadd [#allocation4], 4294967280 }
   0xc   :  { %25 = sfence }
   0xd   :  { %s26_s22 = sld [smem:[#allocation2]]  ;;  %s294_s23 = sld [smem:[#allocation2 + $0x1]]  ;;  %v77_v0 = vld [vmem:[%s551_s1] sm:$0x1]  ;;  %v344_v1 = vld [vmem:[%s551_s1 + $0x1] sm:$0x1] }
   0xe   :  { %s295_s24 = sld [smem:[#allocation2 + $0x2]]  ;;  %s296_s25 = sld [smem:[#allocation2 + $0x3]] }
   0xf   :  { %s297_s26 = sld [smem:[#allocation2 + $0x4]]  ;;  %s298_s27 = sld [smem:[#allocation2 + $0x5]] }
  0x10   :  { %s299_s28 = sld [smem:[#allocation2 + $0x6]]  ;;  %s300_s29 = sld [smem:[#allocation2 + $0x7]] }
  0x11   :  { %s301_s5 = sld [smem:[#allocation2 + $0x8]]  ;;  %s302_s6 = sld [smem:[#allocation2 + $0x9]] }
  0x12   :  { %s303_s0 = sld [smem:[#allocation2 + $0xa]]  ;;  %s481_s9 = sld [smem:[#allocation2 + $0xb]] }
  0x13   :  { %v80_v2 = vstv %s26_s22  ;;  %v82_v3 = vstv %s294_s23  ;;  %s305_s1 = sld [smem:[#allocation2 + $0xc]]  ;;  %s309_s10 = sld [smem:[#allocation2 + $0x10]] }
  0x14   :  { %v81_v4 = vmul.f32 %v80_v2, %v77_v0  ;;  %v83_v5 = vmul.f32 %v344_v1, %v82_v3  ;;  %v91_v6 = vstv %s295_s24  ;;  %v93_v7 = vstv %s296_s25  ;;  %s306_s11 = sld [smem:[#allocation2 + $0xd]]  ;;  %s310_s12 = sld [smem:[#allocation2 + $0x11]] }
  0x15   :  { %v92_v8 = vmul.f32 %v91_v6, %v77_v0  ;;  %v94_v9 = vmul.f32 %v344_v1, %v93_v7  ;;  %v102_v10 = vstv %s297_s26  ;;  %v104_v11 = vstv %s298_s27  ;;  %s307_s13 = sld [smem:[#allocation2 + $0xe]]  ;;  %s311_s14 = sld [smem:[#allocation2 + $0x12]] }
  0x16   :  { %v84_v12 = vadd.f32 %v83_v5, %v81_v4  ;;  %v103_v13 = vmul.f32 %v102_v10, %v77_v0  ;;  %v105_v14 = vmul.f32 %v344_v1, %v104_v11  ;;  %v113_v15 = vstv %s299_s28  ;;  %s484_s15 = sld [smem:[#allocation2 + $0xf]]  ;;  %s486_s16 = sld [smem:[#allocation2 + $0x13]] }
  0x17   :  { %v85_v16 = vstv %s301_s5  ;;  %v95_v17 = vadd.f32 %v94_v9, %v92_v8  ;;  %v96_v18 = vstv %s302_s6  ;;  %v114_v19 = vmul.f32 %v113_v15, %v77_v0  ;;  %s488_s17 = sld [smem:[#allocation2 + $0x14]]  ;;  %s490_s18 = sld [smem:[#allocation2 + $0x15]] }
  0x18   :  { %v86_v20 = vadd.f32 %v85_v16, %v84_v12  ;;  %v106_v21 = vadd.f32 %v105_v14, %v103_v13  ;;  %v107_v22 = vstv %s303_s0  ;;  %v115_v23 = vstv %s300_s29  ;;  %s315_s19 = sld [smem:[#allocation2 + $0x16]]  ;;  %s316_s20 = sld [smem:[#allocation2 + $0x17]] }
  0x19   :  { %v97_v24 = vadd.f32 %v96_v18, %v95_v17  ;;  %v116_v25 = vmul.f32 %v344_v1, %v115_v23  ;;  %v118_v28 = vstv %s481_s9  ;;  %v124_v39 = vstv %s305_s1  ;;  %s317_s21 = sld [smem:[#allocation2 + $0x18]]  ;;  %s318_s22 = sld [smem:[#allocation2 + $0x19]] }
  0x1a   :  { %v87_v26 = vmul.f32 0.5, %v86_v20  ;;  %v108_v27 = vadd.f32 %v107_v22, %v106_v21  ;;  %v141_v40 = vstv %s309_s10  ;;  %v126_v43 = vstv %s306_s11  ;;  %s319_s23 = sld [smem:[#allocation2 + $0x1a]]  ;;  %s496_s24 = sld [smem:[#allocation2 + $0x1b]] }
  0x1b   :  { %v98_v29 = vmul.f32 0.5, %v97_v24  ;;  %v117_v30 = vadd.f32 %v116_v25, %v114_v19  ;;  %v143_v44 = vstv %s310_s12  ;;  %v129_v46 = vstv %s307_s13  ;;  %s498_s25 = sld [smem:[#allocation2 + $0x1c]]  ;;  %s439_s26 = smov [#allocation5]  }
  0x1c   :  { %350 = vtanh.f32 %v87_v26  ;;  %v109_v31 = vmul.f32 0.5, %v108_v27  ;;  %v146_v47 = vstv %s311_s14  ;;  %v132_v56 = vstv %s484_s15  ;;  %s269_s27 = sshll.u32 %s439_s26, 4  ;;  %s270_s27 = int_to_ptr.vmem [resolvable:$true] %s269_s27 }
  0x1d   :  { %352 = vtanh.f32 %v98_v29  ;;  %v119_v32 = vadd.f32 %v118_v28, %v117_v30  ;;  %v149_v58 = vstv %s486_s16  ;;  %v135_v2 = vstv %s488_s17  ;;  %s388_s28 = scalar_lea.vmem %s270_s27, 16  ;;  %s392_s29 = scalar_lea.vmem %s270_s27, 32 }
  0x1e   :  { %354 = vtanh.f32 %v109_v31  ;;  %v152_v3 = vstv %s490_s18  ;;  %v158_v14 = vstv %s315_s19  ;;  %v160_v16 = vstv %s316_s20  ;;  %p389_p3 = scmp.ne.s32.totalorder %s270_s27, %s388_s28  ;;  %p393_p4 = scmp.lt.s32.totalorder %s270_s27, %s270_s27 }
  0x1f   :  { %v120_v33 = vmul.f32 0.5, %v119_v32  ;;  %v163_v20 = vstv %s317_s21  ;;  %v165_v22 = vstv %s318_s22  ;;  %p394_p5 = scmp.lt.s32.totalorder %s392_s29, %s388_s28 }
  0x20   :  { %v173_v23 = vstv %s319_s23  ;;  %v167_v25 = vstv %s496_s24 }
  0x21   :  { %356 = vtanh.f32 %v120_v33  ;;  %v175_v26 = vstv %s498_s25  ;;  %p395_p6 = por %p394_p5, %p393_p4 }
  0x23   :  { %p396_p7 = pnand %p395_p6, %p389_p3 }
  0x26   :  { %v351_v34 = vpop.eup %350 }
  0x27   :  { %v353_v35 = vpop.eup %352  ;;  %v89_v36 = vmul.f32 0.5, %v351_v34 }
  0x28   :  { %v355_v37 = vpop.eup %354  ;;  %v100_v38 = vmul.f32 0.5, %v353_v35 }
  0x29   :  { %v90_v41 = vadd.f32 0.5, %v89_v36  ;;  %v111_v42 = vmul.f32 0.5, %v355_v37 }
  0x2a   :  { %v101_v45 = vadd.f32 0.5, %v100_v38 }
  0x2b   :  { %v357_v48 = vpop.eup %356  ;;  %v112_v49 = vadd.f32 0.5, %v111_v42  ;;  %v125_v50 = vmul.f32 %v124_v39, %v90_v41  ;;  %v142_v51 = vmul.f32 %v141_v40, %v90_v41 }
  0x2c   :  { %v122_v52 = vmul.f32 0.5, %v357_v48  ;;  %v127_v53 = vmul.f32 %v126_v43, %v101_v45  ;;  %v144_v54 = vmul.f32 %v143_v44, %v101_v45 }
  0x2d   :  { %v130_v55 = vmul.f32 %v129_v46, %v112_v49  ;;  %v147_v57 = vmul.f32 %v146_v47, %v112_v49 }
  0x2e   :  { %v123_v59 = vadd.f32 0.5, %v122_v52  ;;  %v128_v60 = vadd.f32 %v127_v53, %v125_v50  ;;  %v145_v61 = vadd.f32 %v144_v54, %v142_v51 }
  0x30   :  { %v131_v62 = vadd.f32 %v130_v55, %v128_v60  ;;  %v133_v63 = vmul.f32 %v132_v56, %v123_v59  ;;  %v148_v0 = vadd.f32 %v147_v57, %v145_v61  ;;  %v150_v1 = vmul.f32 %v149_v58, %v123_v59 }
  0x32   :  { %v134_v4 = vadd.f32 %v133_v63, %v131_v62  ;;  %v151_v5 = vadd.f32 %v150_v1, %v148_v0 }
  0x34   :  { %v136_v6 = vadd.f32 %v135_v2, %v134_v4  ;;  %v153_v7 = vadd.f32 %v152_v3, %v151_v5 }
  0x36   :  { %v137_v8 = vmul.f32 0.5, %v136_v6  ;;  %v154_v9 = vmul.f32 0.5, %v153_v7 }
  0x38   :  { %358 = vtanh.f32 %v137_v8 }
  0x39   :  { %360 = vtanh.f32 %v154_v9 }
  0x42   :  { %v359_v10 = vpop.eup %358 }
  0x43   :  { %v361_v11 = vpop.eup %360  ;;  %v139_v12 = vmul.f32 0.5, %v359_v10 }
  0x44   :  { %v156_v13 = vmul.f32 0.5, %v361_v11 }
  0x45   :  { %v140_v15 = vadd.f32 0.5, %v139_v12 }
  0x46   :  { %v157_v17 = vadd.f32 0.5, %v156_v13 }
  0x47   :  { %v159_v18 = vmul.f32 %v158_v14, %v140_v15 }
  0x48   :  { %v161_v19 = vmul.f32 %v160_v16, %v157_v17 }
  0x4a   :  { %v162_v21 = vadd.f32 %v161_v19, %v159_v18 }
  0x4c   :  { %v164_v24 = vadd.f32 %v163_v20, %v162_v21 }
  0x4e   :  { %v166_v27 = vmul.f32 %v165_v22, %v164_v24  ;;  %v174_v28 = vmul.f32 %v173_v23, %v164_v24  ;;  %259 = vst [vmem:[#allocation5] sm:$0x1] %v164_v24 }
  0x4f   :  { %399 = shalt.err (!%p396_p7)
}
  0x50   :  { %s400_s5 = scalar_lea.hbm %s552_s2, 16 }
  0x51   :  { %p401_p8 = scmp.ne.s32.totalorder %s552_s2, %s400_s5  ;;  %p404_p9 = scmp.lt.u32.totalorder %s400_s5, %s552_s2 }
  0x53   :  { %p406_p10 = pnand %p404_p9, %p401_p8 }
  0x55   :  { %409 = shalt.err (!%p406_p10)
}
  0x56   :  { %272 = dma.vmem_to_hbm [thread:$0]  %s270_s27, 16, %s552_s2, [#allocation3]   ;;  %v168_v29 = vadd.f32 %v167_v25, %v166_v27  ;;  %v176_v30 = vadd.f32 %v175_v26, %v174_v28 }
  0x57   :  { %s322_s10 = sld [smem:[#allocation2 + $0x1d]]  ;;  %s323_s11 = sld [smem:[#allocation2 + $0x1e]] }
  0x58   :  { %v169_v31 = vmul.f32 0.5, %v168_v29  ;;  %v177_v32 = vmul.f32 0.5, %v176_v30  ;;  %s324_s12 = sld [smem:[#allocation2 + $0x1f]]  ;;  %s325_s13 = sld [smem:[#allocation2 + $0x20]] }
  0x59   :  { %s326_s14 = sld [smem:[#allocation2 + $0x21]]  ;;  %s328_s15 = sld [smem:[#allocation2 + $0x23]] }
  0x5a   :  { %362 = vtanh.f32 %v169_v31  ;;  %s327_s16 = sld [smem:[#allocation2 + $0x22]]  ;;  %s329_s17 = sld [smem:[#allocation2 + $0x24]] }
  0x5b   :  { %364 = vtanh.f32 %v177_v32  ;;  %s514_s18 = sld [smem:[#allocation2 + $0x25]]  ;;  %s516_s19 = sld [smem:[#allocation2 + $0x26]] }
  0x5c   :  { %s518_s20 = sld [smem:[#allocation2 + $0x27]]  ;;  %s520_s2 = sld [smem:[#allocation2 + $0x28]] }
  0x5d   :  { %v181_v36 = vstv %s322_s10  ;;  %v183_v37 = vstv %s323_s11  ;;  %s334_s21 = sld [smem:[#allocation2 + $0x29]]  ;;  %s526_s22 = sld [smem:[#allocation2 + $0x2a]] }
  0x5e   :  { %v192_v39 = vstv %s324_s12  ;;  %v194_v43 = vstv %s325_s13  ;;  %s338_s23 = sld [smem:[#allocation2 + $0x2d]]  ;;  %s528_s24 = sld [smem:[#allocation2 + $0x2b]] }
  0x5f   :  { %v203_v40 = vstv %s326_s14  ;;  %v214_v41 = vstv %s328_s15  ;;  %s339_s25 = sld [smem:[#allocation2 + $0x2e]]  ;;  %s530_s26 = sld [smem:[#allocation2 + $0x2c]] }
  0x60   :  { %v205_v44 = vstv %s327_s16  ;;  %v216_v45 = vstv %s329_s17  ;;  %s340_s27 = sld [smem:[#allocation2 + $0x2f]]  ;;  %s532_s28 = sld [smem:[#allocation2 + $0x30]] }
  0x61   :  { %v186_v55 = vstv %s514_s18  ;;  %v197_v56 = vstv %s516_s19  ;;  %s342_s29 = sld [smem:[#allocation2 + $0x31]]  ;;  %s343_s30 = sld [smem:[#allocation2 + $0x32]] }
  0x62   :  { %v208_v57 = vstv %s518_s20  ;;  %v219_v58 = vstv %s520_s2  ;;  %s440_s4 = smov [#allocation6]  }
  0x63   :  { %v225_v12 = vstv %s334_s21  ;;  %v227_v13 = vstv %s526_s22  ;;  %s278_s5 = sshll.u32 %s440_s4, 4  ;;  %s279_s5 = int_to_ptr.vmem [resolvable:$true] %s278_s5 }
  0x64   :  { %v363_v33 = vpop.eup %362  ;;  %v242_v14 = vstv %s338_s23  ;;  %v230_v18 = vstv %s528_s24  ;;  %s410_s6 = scalar_lea.vmem %s279_s5, 32  ;;  %p415_p12 = scmp.lt.s32.totalorder %s279_s5, %s279_s5 }
  0x65   :  { %v365_v34 = vpop.eup %364  ;;  %v171_v35 = vmul.f32 0.5, %v363_v33  ;;  %v244_v19 = vstv %s339_s25  ;;  %v233_v22 = vstv %s530_s26  ;;  %p411_p11 = scmp.ne.s32.totalorder %s279_s5, %s410_s6  ;;  %p416_p13 = scmp.lt.s32.totalorder %s410_s6, %s410_s6 }
  0x66   :  { %v179_v38 = vmul.f32 0.5, %v365_v34  ;;  %v247_v23 = vstv %s340_s27  ;;  %v250_v27 = vstv %s532_s28 }
  0x67   :  { %v172_v42 = vadd.f32 0.5, %v171_v35  ;;  %p417_p0 = por %p416_p13, %p415_p12 }
  0x68   :  { %v180_v46 = vadd.f32 0.5, %v179_v38 }
  0x69   :  { %v182_v47 = vmul.f32 %v181_v36, %v172_v42  ;;  %v193_v48 = vmul.f32 %v192_v39, %v172_v42  ;;  %v204_v49 = vmul.f32 %v203_v40, %v172_v42  ;;  %v215_v50 = vmul.f32 %v214_v41, %v172_v42  ;;  %p418_p1 = pnand %p417_p0, %p411_p11 }
  0x6a   :  { %v184_v51 = vmul.f32 %v183_v37, %v180_v46  ;;  %v195_v52 = vmul.f32 %v194_v43, %v180_v46  ;;  %v206_v53 = vmul.f32 %v205_v44, %v180_v46  ;;  %v217_v54 = vmul.f32 %v216_v45, %v180_v46 }
  0x6b   :  { %v236_v39 = vstv %s342_s29  ;;  %v253_v40 = vstv %s343_s30 }
  0x6c   :  { %v185_v59 = vadd.f32 %v184_v51, %v182_v47  ;;  %v196_v60 = vadd.f32 %v195_v52, %v193_v48  ;;  %v207_v61 = vadd.f32 %v206_v53, %v204_v49  ;;  %v218_v62 = vadd.f32 %v217_v54, %v215_v50 }
  0x6e   :  { %v187_v63 = vadd.f32 %v186_v55, %v185_v59  ;;  %v198_v0 = vadd.f32 %v197_v56, %v196_v60  ;;  %v209_v1 = vadd.f32 %v208_v57, %v207_v61  ;;  %v220_v2 = vadd.f32 %v219_v58, %v218_v62 }
  0x70   :  { %v188_v3 = vmul.f32 0.5, %v187_v63  ;;  %v199_v4 = vmul.f32 0.5, %v198_v0  ;;  %v210_v5 = vmul.f32 0.5, %v209_v1  ;;  %v221_v6 = vmul.f32 0.5, %v220_v2 }
  0x72   :  { %366 = vtanh.f32 %v188_v3 }
  0x73   :  { %368 = vtanh.f32 %v199_v4 }
  0x74   :  { %370 = vtanh.f32 %v210_v5 }
  0x75   :  { %372 = vtanh.f32 %v221_v6 }
  0x7c   :  { %v367_v7 = vpop.eup %366 }
  0x7d   :  { %v369_v8 = vpop.eup %368  ;;  %v190_v9 = vmul.f32 0.5, %v367_v7 }
  0x7e   :  { %v371_v10 = vpop.eup %370  ;;  %v201_v11 = vmul.f32 0.5, %v369_v8 }
  0x7f   :  { %v373_v15 = vpop.eup %372  ;;  %v191_v16 = vadd.f32 0.5, %v190_v9  ;;  %v212_v17 = vmul.f32 0.5, %v371_v10 }
  0x80   :  { %v202_v20 = vadd.f32 0.5, %v201_v11  ;;  %v223_v21 = vmul.f32 0.5, %v373_v15 }
  0x81   :  { %v213_v24 = vadd.f32 0.5, %v212_v17  ;;  %v226_v25 = vmul.f32 %v225_v12, %v191_v16  ;;  %v243_v26 = vmul.f32 %v242_v14, %v191_v16 }
  0x82   :  { %v224_v28 = vadd.f32 0.5, %v223_v21  ;;  %v228_v29 = vmul.f32 %v227_v13, %v202_v20  ;;  %v245_v30 = vmul.f32 %v244_v19, %v202_v20 }
  0x83   :  { %v231_v31 = vmul.f32 %v230_v18, %v213_v24  ;;  %v248_v32 = vmul.f32 %v247_v23, %v213_v24 }
  0x84   :  { %v229_v33 = vadd.f32 %v228_v29, %v226_v25  ;;  %v234_v34 = vmul.f32 %v233_v22, %v224_v28  ;;  %v246_v35 = vadd.f32 %v245_v30, %v243_v26  ;;  %v251_v36 = vmul.f32 %v250_v27, %v224_v28 }
  0x86   :  { %v232_v37 = vadd.f32 %v231_v31, %v229_v33  ;;  %v249_v38 = vadd.f32 %v248_v32, %v246_v35 }
  0x88   :  { %v235_v41 = vadd.f32 %v234_v34, %v232_v37  ;;  %v252_v42 = vadd.f32 %v251_v36, %v249_v38 }
  0x8a   :  { %v237_v43 = vadd.f32 %v236_v39, %v235_v41  ;;  %v254_v44 = vadd.f32 %v253_v40, %v252_v42 }
  0x8c   :  { %v238_v45 = vmul.f32 0.5, %v237_v43  ;;  %v255_v46 = vmul.f32 0.5, %v254_v44 }
  0x8e   :  { %374 = vtanh.f32 %v238_v45 }
  0x8f   :  { %376 = vtanh.f32 %v255_v46 }
  0x98   :  { %v375_v47 = vpop.eup %374 }
  0x99   :  { %v377_v48 = vpop.eup %376  ;;  %v240_v49 = vmul.f32 0.5, %v375_v47 }
  0x9a   :  { %v257_v50 = vmul.f32 0.5, %v377_v48 }
  0x9b   :  { %v241_v51 = vadd.f32 0.5, %v240_v49 }
  0x9c   :  { %v258_v52 = vadd.f32 0.5, %v257_v50 }
  0x9d   :  { %260 = vst [vmem:[#allocation6] sm:$0x1] %v241_v51 }
  0x9e   :  { %262 = vst [vmem:[#allocation6 + $0x1] sm:$0x1] %v258_v52 }
  0x9f   :  { %421 = shalt.err (!%p418_p1)
}
  0xa0   :  { %s422_s0 = scalar_lea.hbm %s553_s3, 32 }
  0xa1   :  { %p423_p2 = scmp.ne.s32.totalorder %s553_s3, %s422_s0  ;;  %p426_p3 = scmp.lt.u32.totalorder %s422_s0, %s553_s3 }
  0xa3   :  { %p428_p4 = pnand %p426_p3, %p423_p2 }
  0xa5   :  { %431 = shalt.err (!%p428_p4)
}
  0xa6   :  { %s441_s12 = smov 16   ;;  %s442_s13 = smov 1  }
  0xa7   :  { %284 = dma.vmem_to_hbm [thread:$0]  %s279_s5, 32, %s553_s3, [#allocation7], %s441_s12, %s441_s12, %s442_s13  }
  0xa8   :  { %434 = dma.done.wait [#allocation3], 16  }
  0xa9   :  { %435 = vsyncadd [#allocation3], 4294967280 }
  0xaa   :  { %436 = dma.done.wait [#allocation7], 32  }
  0xab   :  { %437 = vsyncadd [#allocation7], 4294967264 }
  0xac   :  { %291 = vsyncpa [#allocation3], 1 }
  0xad   :  { %292 = vsyncpa [#allocation7], 1 }
  0xae   :  { %293 = vsyncpa [#allocation4], 1 }

</bundles_post_ra>
